<compile_context>
chip_gen: v7x
topology: tpu7x:2x2x1
jax: 0.10.0
libtpu: 0.0.40
codegen_flags: <defaults>
</compile_context>

<pallas_src>
import math

import jax
import jax.numpy as jnp
from jax.experimental import pallas as pl
from jax.experimental.pallas import tpu as pltpu


def tatt_kernel(w1_ref, seq_ref, w2_ref, w_ref, b_ref, v_ref, out_ref):
    # w1_ref : (1, C)     SMEM  -- conv1 1x1 weights (channel mixing)
    # seq_ref: (C, N, T)  VMEM  -- one batch block of seq in NATIVE layout
    # w2_ref : (N, 1)     VMEM  -- conv2 1x1 weights (node mixing, column)
    # w_ref  : (N, C)     b_ref, v_ref: (T, T)
    # out_ref: (T, T)     -- one batch block of the output
    C, N, T = seq_ref.shape
    f32 = jnp.float32

    w2col = w2_ref[...]                                        # (N, 1)
    w_mat = w_ref[...]                                         # (N, C)

    # ---- fused single pass over channels -------------------------------
    #   g1[n, t]  = sum_c w1[c] * seq[c, n, t]          (= f1 transposed)
    #   f2[c, t]  = sum_n w2[n] * seq[c, n, t]           (sublane reduce)
    #   wf2[n, t] = sum_c w[n, c] * f2[c, t]             (C VPU outer-product MACs)
    # Each seq[c] slice is loaded from VMEM exactly once.
    g1 = jnp.zeros((N, T), f32)
    wf2 = jnp.zeros((N, T), f32)
    for c in range(C):
        s_c = seq_ref[c].astype(f32)                           # (N, T)
        g1 = g1 + w1_ref[0, c] * s_c                           # conv1 accumulate
        f2_c = jnp.sum(w2col * s_c, axis=0, keepdims=True)     # (1, T) conv2 row
        wf2 = wf2 + w_mat[:, c:c + 1] * f2_c                   # (N, T) accumulate

    # ---- attention logits ----------------------------------------------
    # logits[t, s] = sum_n f1[t, n] * wf2[n, s]; g1 is K-major, so a single
    # small in-kernel transpose feeds the MXU (no wrapper transpose of seq).
    logits = jnp.dot(g1.T, wf2, preferred_element_type=f32)    # (T, T), K = N
    logits = logits + b_ref[...]
    logits = 1.0 / (1.0 + jnp.exp(-logits))                    # sigmoid (exp on EUP)

    # v @ logits : v stays 2D per batch step (no broadcast, one RHS push).
    logits = jnp.dot(v_ref[...], logits, preferred_element_type=f32)

    # ---- max-subtract over module dim 1 (axis 0 per batch), then softmax.
    # NOTE: this max varies along the softmax axis, so it genuinely changes
    # the result -- it is part of the module's math, not a stability trick.
    logits = logits - jnp.max(logits, axis=0, keepdims=True)
    m = jnp.max(logits, axis=-1, keepdims=True)
    e = jnp.exp(logits - m)
    # Exact normalize (keeps the 1e-5 comparison tight); pl.reciprocal(approx=True)
    # is an option if tolerance is relaxed.
    out_ref[...] = (e / jnp.sum(e, axis=-1, keepdims=True)).astype(out_ref.dtype)


def tatt_forward(seq, conv1_w, conv2_w, w, b, v):
    """seq: (B, C, N, T) native layout; conv1_w: (C,); conv2_w: (N,);
    w: (N, C); b, v: (T, T).  seq may be f32 or bf16 (f32 accumulation)."""
    B, C, N, T = seq.shape
    f32 = jnp.float32
    w1 = conv1_w.reshape(1, C).astype(f32)       # SMEM scalars
    w2 = conv2_w.reshape(N, 1).astype(f32)       # column for sublane reduce
    w_f = w.astype(f32)
    b_f = b.astype(f32)
    v_f = v.astype(f32)

    itemsize = jnp.dtype(seq.dtype).itemsize
    # Per-step VMEM budget: double-buffered seq/out blocks + resident params
    # + in-kernel temporaries, with headroom (keeps v7x's 64 MiB happy).
    block_bytes = (
        2 * C * N * T * itemsize                 # seq block, double-buffered
        + 2 * T * T * 4                          # out block, double-buffered
        + 2 * (N * C + N + 2 * T * T + C) * 4    # parameters (conservative)
        + (3 * N * T + 4 * T * T) * 4            # temporaries upper bound
    )
    vmem_limit = int(min(96 * 1024 * 1024, max(4 * 1024 * 1024, 4 * block_bytes)))

    flops = int(2 * B * (3 * C * N * T + N * T * T + T * T * T) + 10 * B * T * T)
    transcendentals = int(2 * B * T * T)
    bytes_accessed = int(B * C * N * T * itemsize + B * T * T * 4
                         + (N * C + N + 2 * T * T + C) * 4)

    return pl.pallas_call(
        tatt_kernel,
        out_shape=jax.ShapeDtypeStruct((B, T, T), f32),
        grid=(B,),
        in_specs=[
            pl.BlockSpec((1, C), lambda bi: (0, 0),
                         memory_space=pltpu.MemorySpace.SMEM),      # conv1 weights
            pl.BlockSpec((None, C, N, T), lambda bi: (bi, 0, 0, 0)),  # seq (native)
            pl.BlockSpec((N, 1), lambda bi: (0, 0)),                # conv2 weights
            pl.BlockSpec((N, C), lambda bi: (0, 0)),                # w
            pl.BlockSpec((T, T), lambda bi: (0, 0)),                # b
            pl.BlockSpec((T, T), lambda bi: (0, 0)),                # v
        ],
        out_specs=pl.BlockSpec((None, T, T), lambda bi: (bi, 0, 0)),
        compiler_params=pltpu.CompilerParams(
            dimension_semantics=("parallel",),
            vmem_limit_bytes=vmem_limit),
        cost_estimate=pl.CostEstimate(
            flops=flops,
            transcendentals=transcendentals,
            bytes_accessed=bytes_accessed),
    )(w1, seq, w2, w_f, b_f, v_f)


if __name__ == "__main__":
    # Small shapes consistent with TATT.forward: seq is (B, c_in, num_nodes, tem_size).
    B, C, N, T = 2, 4, 16, 16

    key = jax.random.PRNGKey(0)
    k_seq, k_c1, k_c2, k_w, k_b, k_v = jax.random.split(key, 6)

    seq = jax.random.normal(k_seq, (B, C, N, T), dtype=jnp.float32)

    conv1_w = jax.random.normal(k_c1, (C,), dtype=jnp.float32) * 0.5
    conv2_w = jax.random.normal(k_c2, (N,), dtype=jnp.float32) * 0.5

    bound_w = math.sqrt(6.0 / (N + C))
    w = jax.random.uniform(k_w, (N, C), dtype=jnp.float32,
                           minval=-bound_w, maxval=bound_w)
    # Module initializes b to zeros; use small random values so the +b path is tested.
    b = jax.random.normal(k_b, (T, T), dtype=jnp.float32) * 0.1
    bound_v = math.sqrt(6.0 / (T + T))
    v = jax.random.uniform(k_v, (T, T), dtype=jnp.float32,
                           minval=-bound_v, maxval=bound_v)

    out = jax.block_until_ready(tatt_forward(seq, conv1_w, conv2_w, w, b, v))

    # Pure-JAX reference of the exact PyTorch math.
    f1 = jnp.einsum('bcnt,c->btn', seq, conv1_w)              # conv1(c1).squeeze(1)
    f2 = jnp.einsum('bcnt,n->bct', seq, conv2_w)              # conv2(c2).squeeze(1)
    lg = jax.nn.sigmoid(
        jnp.einsum('btc,bcs->bts', jnp.einsum('btn,nc->btc', f1, w), f2) + b)
    lg = jnp.einsum('ts,bsr->btr', v, lg)
    lg = lg - jnp.max(lg, axis=1, keepdims=True)
    ref = jax.nn.softmax(lg, axis=-1)

    assert out.shape == (B, T, T)
    assert jnp.allclose(out, ref, atol=1e-5, rtol=1e-4), "mismatch vs reference"

    print("KERNEL_OK")
</pallas_src>

<mosaic_0001>
module attributes {stable_mosaic.version = 11 : i64} {
  func.func @tatt_kernel(%arg0: i32, %arg1: memref<1x4xf32, #tpu.memory_space<smem>>, %arg2: memref<1x4x16x16xf32, #tpu.memory_space<vmem>>, %arg3: memref<16x1xf32, #tpu.memory_space<vmem>>, %arg4: memref<16x4xf32, #tpu.memory_space<vmem>>, %arg5: memref<16x16xf32, #tpu.memory_space<vmem>>, %arg6: memref<16x16xf32, #tpu.memory_space<vmem>>, %arg7: memref<1x16x16xf32, #tpu.memory_space<vmem>>) attributes {dimension_semantics = [#tpu.dimension_semantics<parallel>], iteration_bounds = array<i64: 2>, scalar_prefetch = 0 : i64, scratch_operands = 0 : i64, tpu.core_type = #tpu.core_type<tc>, window_params = [{transform_indices = @transform_0, window_bounds = array<i64: 1, 4>}, {transform_indices = @transform_1, window_bounds = array<i64: 1, 4, 16, 16>}, {pipeline_mode = #tpu.pipeline_mode<synchronous>, transform_indices = @transform_2, window_bounds = array<i64: 16, 1>}, {pipeline_mode = #tpu.pipeline_mode<synchronous>, transform_indices = @transform_3, window_bounds = array<i64: 16, 4>}, {pipeline_mode = #tpu.pipeline_mode<synchronous>, transform_indices = @transform_4, window_bounds = array<i64: 16, 16>}, {pipeline_mode = #tpu.pipeline_mode<synchronous>, transform_indices = @transform_5, window_bounds = array<i64: 16, 16>}, {transform_indices = @transform_6, window_bounds = array<i64: 1, 16, 16>}]} {
    %c0 = arith.constant 0 : index
    %c0_0 = arith.constant 0 : index
    %0 = vector.load %arg3[%c0, %c0_0] : memref<16x1xf32, #tpu.memory_space<vmem>>, vector<16x1xf32>
    %c0_1 = arith.constant 0 : index
    %c0_2 = arith.constant 0 : index
    %1 = vector.load %arg4[%c0_1, %c0_2] : memref<16x4xf32, #tpu.memory_space<vmem>>, vector<16x4xf32>
    %cst = arith.constant 0.000000e+00 : f32
    %2 = vector.broadcast %cst : f32 to vector<16x16xf32>
    %cst_3 = arith.constant 0.000000e+00 : f32
    %3 = vector.broadcast %cst_3 : f32 to vector<16x16xf32>
    %c0_4 = arith.constant 0 : index
    %c0_5 = arith.constant 0 : index
    %c0_6 = arith.constant 0 : index
    %c0_7 = arith.constant 0 : index
    %4 = vector.load %arg2[%c0_4, %c0_5, %c0_6, %c0_7] : memref<1x4x16x16xf32, #tpu.memory_space<vmem>>, vector<1x1x16x16xf32>
    %5 = vector.shape_cast %4 : vector<1x1x16x16xf32> to vector<16x16xf32>
    %c0_8 = arith.constant 0 : index
    %c0_9 = arith.constant 0 : index
    %6 = memref.load %arg1[%c0_8, %c0_9] : memref<1x4xf32, #tpu.memory_space<smem>>
    %7 = vector.broadcast %6 : f32 to vector<16x16xf32>
    %8 = arith.mulf %7, %5 : vector<16x16xf32>
    %9 = arith.addf %2, %8 : vector<16x16xf32>
    %10 = vector.broadcast %0 : vector<16x1xf32> to vector<16x16xf32>
    %11 = arith.mulf %10, %5 : vector<16x16xf32>
    %cst_10 = arith.constant dense<0.000000e+00> : vector<16xf32>
    %12 = vector.multi_reduction <add>, %11, %cst_10 [0] : vector<16x16xf32> to vector<16xf32>
    %13 = vector.shape_cast %12 : vector<16xf32> to vector<1x16xf32>
    %14 = vector.extract_strided_slice %1 {offsets = [0, 0], sizes = [16, 1], strides = [1, 1]} : vector<16x4xf32> to vector<16x1xf32>
    %15 = vector.broadcast %14 : vector<16x1xf32> to vector<16x16xf32>
    %16 = vector.broadcast %13 : vector<1x16xf32> to vector<16x16xf32>
    %17 = arith.mulf %15, %16 : vector<16x16xf32>
    %18 = arith.addf %3, %17 : vector<16x16xf32>
    %c0_11 = arith.constant 0 : index
    %c1 = arith.constant 1 : index
    %c0_12 = arith.constant 0 : index
    %c0_13 = arith.constant 0 : index
    %19 = vector.load %arg2[%c0_11, %c1, %c0_12, %c0_13] : memref<1x4x16x16xf32, #tpu.memory_space<vmem>>, vector<1x1x16x16xf32>
    %20 = vector.shape_cast %19 : vector<1x1x16x16xf32> to vector<16x16xf32>
    %c0_14 = arith.constant 0 : index
    %c1_15 = arith.constant 1 : index
    %21 = memref.load %arg1[%c0_14, %c1_15] : memref<1x4xf32, #tpu.memory_space<smem>>
    %22 = vector.broadcast %21 : f32 to vector<16x16xf32>
    %23 = arith.mulf %22, %20 : vector<16x16xf32>
    %24 = arith.addf %9, %23 : vector<16x16xf32>
    %25 = vector.broadcast %0 : vector<16x1xf32> to vector<16x16xf32>
    %26 = arith.mulf %25, %20 : vector<16x16xf32>
    %cst_16 = arith.constant dense<0.000000e+00> : vector<16xf32>
    %27 = vector.multi_reduction <add>, %26, %cst_16 [0] : vector<16x16xf32> to vector<16xf32>
    %28 = vector.shape_cast %27 : vector<16xf32> to vector<1x16xf32>
    %29 = vector.extract_strided_slice %1 {offsets = [0, 1], sizes = [16, 1], strides = [1, 1]} : vector<16x4xf32> to vector<16x1xf32>
    %30 = vector.broadcast %29 : vector<16x1xf32> to vector<16x16xf32>
    %31 = vector.broadcast %28 : vector<1x16xf32> to vector<16x16xf32>
    %32 = arith.mulf %30, %31 : vector<16x16xf32>
    %33 = arith.addf %18, %32 : vector<16x16xf32>
    %c0_17 = arith.constant 0 : index
    %c2 = arith.constant 2 : index
    %c0_18 = arith.constant 0 : index
    %c0_19 = arith.constant 0 : index
    %34 = vector.load %arg2[%c0_17, %c2, %c0_18, %c0_19] : memref<1x4x16x16xf32, #tpu.memory_space<vmem>>, vector<1x1x16x16xf32>
    %35 = vector.shape_cast %34 : vector<1x1x16x16xf32> to vector<16x16xf32>
    %c0_20 = arith.constant 0 : index
    %c2_21 = arith.constant 2 : index
    %36 = memref.load %arg1[%c0_20, %c2_21] : memref<1x4xf32, #tpu.memory_space<smem>>
    %37 = vector.broadcast %36 : f32 to vector<16x16xf32>
    %38 = arith.mulf %37, %35 : vector<16x16xf32>
    %39 = arith.addf %24, %38 : vector<16x16xf32>
    %40 = vector.broadcast %0 : vector<16x1xf32> to vector<16x16xf32>
    %41 = arith.mulf %40, %35 : vector<16x16xf32>
    %cst_22 = arith.constant dense<0.000000e+00> : vector<16xf32>
    %42 = vector.multi_reduction <add>, %41, %cst_22 [0] : vector<16x16xf32> to vector<16xf32>
    %43 = vector.shape_cast %42 : vector<16xf32> to vector<1x16xf32>
    %44 = vector.extract_strided_slice %1 {offsets = [0, 2], sizes = [16, 1], strides = [1, 1]} : vector<16x4xf32> to vector<16x1xf32>
    %45 = vector.broadcast %44 : vector<16x1xf32> to vector<16x16xf32>
    %46 = vector.broadcast %43 : vector<1x16xf32> to vector<16x16xf32>
    %47 = arith.mulf %45, %46 : vector<16x16xf32>
    %48 = arith.addf %33, %47 : vector<16x16xf32>
    %c0_23 = arith.constant 0 : index
    %c3 = arith.constant 3 : index
    %c0_24 = arith.constant 0 : index
    %c0_25 = arith.constant 0 : index
    %49 = vector.load %arg2[%c0_23, %c3, %c0_24, %c0_25] : memref<1x4x16x16xf32, #tpu.memory_space<vmem>>, vector<1x1x16x16xf32>
    %50 = vector.shape_cast %49 : vector<1x1x16x16xf32> to vector<16x16xf32>
    %c0_26 = arith.constant 0 : index
    %c3_27 = arith.constant 3 : index
    %51 = memref.load %arg1[%c0_26, %c3_27] : memref<1x4xf32, #tpu.memory_space<smem>>
    %52 = vector.broadcast %51 : f32 to vector<16x16xf32>
    %53 = arith.mulf %52, %50 : vector<16x16xf32>
    %54 = arith.addf %39, %53 : vector<16x16xf32>
    %55 = vector.broadcast %0 : vector<16x1xf32> to vector<16x16xf32>
    %56 = arith.mulf %55, %50 : vector<16x16xf32>
    %cst_28 = arith.constant dense<0.000000e+00> : vector<16xf32>
    %57 = vector.multi_reduction <add>, %56, %cst_28 [0] : vector<16x16xf32> to vector<16xf32>
    %58 = vector.shape_cast %57 : vector<16xf32> to vector<1x16xf32>
    %59 = vector.extract_strided_slice %1 {offsets = [0, 3], sizes = [16, 1], strides = [1, 1]} : vector<16x4xf32> to vector<16x1xf32>
    %60 = vector.broadcast %59 : vector<16x1xf32> to vector<16x16xf32>
    %61 = vector.broadcast %58 : vector<1x16xf32> to vector<16x16xf32>
    %62 = arith.mulf %60, %61 : vector<16x16xf32>
    %63 = arith.addf %48, %62 : vector<16x16xf32>
    %64 = tpu.transpose %54, [1, 0] : vector<16x16xf32> -> vector<16x16xf32>
    %cst_29 = arith.constant dense<0.000000e+00> : vector<16x16xf32>
    %65 = tpu.matmul %64, %63, %cst_29 {dimension_numbers = #tpu.dot_dimension_numbers<[1], [0], [0], [1], [0, 0, 1, 1], [], []>} : vector<16x16xf32>, vector<16x16xf32>, vector<16x16xf32> -> vector<16x16xf32>
    %c0_30 = arith.constant 0 : index
    %c0_31 = arith.constant 0 : index
    %66 = vector.load %arg5[%c0_30, %c0_31] : memref<16x16xf32, #tpu.memory_space<vmem>>, vector<16x16xf32>
    %67 = arith.addf %65, %66 : vector<16x16xf32>
    %cst_32 = arith.constant 0.000000e+00 : f32
    %68 = vector.broadcast %cst_32 : f32 to vector<16x16xf32>
    %69 = arith.subf %68, %67 : vector<16x16xf32>
    %70 = math.exp %69 : vector<16x16xf32>
    %cst_33 = arith.constant 1.000000e+00 : f32
    %71 = vector.broadcast %cst_33 : f32 to vector<16x16xf32>
    %72 = arith.addf %71, %70 : vector<16x16xf32>
    %cst_34 = arith.constant 1.000000e+00 : f32
    %73 = vector.broadcast %cst_34 : f32 to vector<16x16xf32>
    %74 = arith.divf %73, %72 : vector<16x16xf32>
    %c0_35 = arith.constant 0 : index
    %c0_36 = arith.constant 0 : index
    %75 = vector.load %arg6[%c0_35, %c0_36] : memref<16x16xf32, #tpu.memory_space<vmem>>, vector<16x16xf32>
    %cst_37 = arith.constant dense<0.000000e+00> : vector<16x16xf32>
    %76 = tpu.matmul %75, %74, %cst_37 {dimension_numbers = #tpu.dot_dimension_numbers<[1], [0], [0], [1], [0, 0, 1, 1], [], []>} : vector<16x16xf32>, vector<16x16xf32>, vector<16x16xf32> -> vector<16x16xf32>
    %cst_38 = arith.constant dense<0xFF800000> : vector<16xf32>
    %77 = vector.multi_reduction <maximumf>, %76, %cst_38 [0] : vector<16x16xf32> to vector<16xf32>
    %78 = vector.shape_cast %77 : vector<16xf32> to vector<1x16xf32>
    %79 = vector.broadcast %78 : vector<1x16xf32> to vector<16x16xf32>
    %80 = arith.subf %76, %79 : vector<16x16xf32>
    %cst_39 = arith.constant dense<0xFF800000> : vector<16xf32>
    %81 = vector.multi_reduction <maximumf>, %80, %cst_39 [1] : vector<16x16xf32> to vector<16xf32>
    %82 = vector.shape_cast %81 : vector<16xf32> to vector<16x1xf32>
    %83 = vector.broadcast %82 : vector<16x1xf32> to vector<16x16xf32>
    %84 = arith.subf %80, %83 : vector<16x16xf32>
    %85 = math.exp %84 : vector<16x16xf32>
    %cst_40 = arith.constant dense<0.000000e+00> : vector<16xf32>
    %86 = vector.multi_reduction <add>, %85, %cst_40 [1] : vector<16x16xf32> to vector<16xf32>
    %87 = vector.shape_cast %86 : vector<16xf32> to vector<16x1xf32>
    %88 = vector.broadcast %87 : vector<16x1xf32> to vector<16x16xf32>
    %89 = arith.divf %85, %88 : vector<16x16xf32>
    %c0_41 = arith.constant 0 : index
    %c0_42 = arith.constant 0 : index
    %c0_43 = arith.constant 0 : index
    %90 = vector.load %arg7[%c0_41, %c0_42, %c0_43] : memref<1x16x16xf32, #tpu.memory_space<vmem>>, vector<1x16x16xf32>
    %91 = vector.shape_cast %90 : vector<1x16x16xf32> to vector<16x16xf32>
    %92 = vector.shape_cast %89 : vector<16x16xf32> to vector<1x16x16xf32>
    tpu.vector_store %arg7[%c0_41, %c0_42, %c0_43], %92 {strides = array<i32>} : memref<1x16x16xf32, #tpu.memory_space<vmem>>, vector<1x16x16xf32>,
    return
  }
  func.func @transform_0(%arg0: i32) -> (i32, i32) {
    %c0_i32 = arith.constant 0 : i32
    %c0_i32_0 = arith.constant 0 : i32
    %c0_i32_1 = arith.constant 0 : i32
    return %c0_i32, %c0_i32_0 : i32, i32
  }
  func.func @transform_1(%arg0: i32) -> (i32, i32, i32, i32) {
    %c0_i32 = arith.constant 0 : i32
    %c0_i32_0 = arith.constant 0 : i32
    %c0_i32_1 = arith.constant 0 : i32
    %c0_i32_2 = arith.constant 0 : i32
    return %arg0, %c0_i32, %c0_i32_0, %c0_i32_1 : i32, i32, i32, i32
  }
  func.func @transform_2(%arg0: i32) -> (i32, i32) {
    %c0_i32 = arith.constant 0 : i32
    %c0_i32_0 = arith.constant 0 : i32
    %c0_i32_1 = arith.constant 0 : i32
    return %c0_i32, %c0_i32_0 : i32, i32
  }
  func.func @transform_3(%arg0: i32) -> (i32, i32) {
    %c0_i32 = arith.constant 0 : i32
    %c0_i32_0 = arith.constant 0 : i32
    %c0_i32_1 = arith.constant 0 : i32
    return %c0_i32, %c0_i32_0 : i32, i32
  }
  func.func @transform_4(%arg0: i32) -> (i32, i32) {
    %c0_i32 = arith.constant 0 : i32
    %c0_i32_0 = arith.constant 0 : i32
    %c0_i32_1 = arith.constant 0 : i32
    return %c0_i32, %c0_i32_0 : i32, i32
  }
  func.func @transform_5(%arg0: i32) -> (i32, i32) {
    %c0_i32 = arith.constant 0 : i32
    %c0_i32_0 = arith.constant 0 : i32
    %c0_i32_1 = arith.constant 0 : i32
    return %c0_i32, %c0_i32_0 : i32, i32
  }
  func.func @transform_6(%arg0: i32) -> (i32, i32, i32) {
    %c0_i32 = arith.constant 0 : i32
    %c0_i32_0 = arith.constant 0 : i32
    %c0_i32_1 = arith.constant 0 : i32
    return %arg0, %c0_i32, %c0_i32_0 : i32, i32, i32
  }
}

</mosaic_0001>

<bundles_post_ra>
// kernel: tpu_custom_call.1
= control target key start
LH: loop header
LB: loop body
LE: loop exit
PB: predicated region body
PF: predicated region fallthrough
CT: control target
= control target key end

     0   :  { %11 = vsyncpa [#allocation5], 0  ;;  %s1330_s0 = inlined_call_operand.vmem [shape: f32[1,4], index: 0, kind: input, shape index: {}]   ;;  %s1331_s1 = inlined_call_operand.hbm [shape: f32[2,4,16,16], index: 1, kind: input, shape index: {}]   ;;  %s1332_s2 = inlined_call_operand.vmem [shape: f32[16,1], index: 2, kind: input, shape index: {}]   ;;  %s1333_s3 = inlined_call_operand.vmem [shape: f32[16,4], index: 3, kind: input, shape index: {}]   ;;  %s1334_s4 = inlined_call_operand.vmem [shape: f32[16,16], index: 4, kind: input, shape index: {}]   ;;  %s1335_s5 = inlined_call_operand.vmem [shape: f32[16,16], index: 5, kind: input, shape index: {}]   ;;  %s1336_s6 = inlined_call_operand.hbm [shape: f32[2,16,16], index: 6, kind: output, shape index: {}]  }
   0x1   :  { %12 = vsyncpa [#allocation3], 0 }
   0x2   :  { %14 = vsyncpa [#allocation3 + $0x1], 0 }
   0x3   :  { %15 = vsyncpa [#allocation4], 0 }
   0x4   :  { %17 = vsyncpa [#allocation4 + $0x1], 0  ;;  %s1086_s21 = smov 0   ;;  %s1088_s22 = smov 0  }
   0x5   :  { %s1090_s23 = smov 0   ;;  %s1092_s24 = smov 0  }
   0x6 LB: > { %s1107_s25 = sadd.s32 4294967295, %s1038_s24   ;;  %s772_s26 = sadd.s32 4294967294, %s1038_s24   ;;  %s1038_s24 = sphi %s1092_s24, %s1356_s24   ;;  %s1034_s23 = sphi %s1090_s23, %s1355_s23   ;;  %s1030_s22 = sphi %s1088_s22, %s1354_s22   ;;  %s1026_s21 = sphi %s1086_s21, %s1353_s21  }
   0x7   : > { %s1111_s27 = sadd.s32 1, %s1038_s24   ;;  %s51_s28 = sadd.s32 1, %s1034_s23 }
   0x8   : > { %s48_s29 = ssub.s32 %s1038_s24, %s1111_s27  ;;  %p58_p0 = scmp.ne.s32.totalorder %s1034_s23, %s1030_s22 }
   0x9   : > { %p49_p1 = scmp.eq.s32.totalorder %s48_s29, 0  ;;  %p59_p2 = scmp.eq.s32.totalorder %s1038_s24, 0 }
   0xa   : > { %p64_p3 = scmp.ne.s32.totalorder %s1030_s22, %s1026_s21  ;;  %p1338_p4 = scmp.eq.s32.totalorder %s1107_s25, 0 }
   0xb   : > { %s1123_s30 = scalar_select %p49_p1, %s1034_s23, %s51_s28  }
   0xc   : > { %p1125_p5 = por %p59_p2, %p58_p0  ;;  %p1131_p6 = por %p1338_p4, %p64_p3 }
   0xd   : > { %p172_p7 = scmp.eq.s32.totalorder %s1107_s25, 1  ;;  %p178_p8 = scmp.eq.s32.totalorder %s772_s26, 1 }
   0xe   : > { %s1341_s8 = scalar_select %p1131_p6, 1, 0 }
   0xf   : > { %p773_p9 = scmp.ge.s32.totalorder %s1038_s24, 1  ;;  %p185_p10 = scmp.lt.s32.totalorder %s1038_s24, 3 }
  0x10   : > { %p1138_p11 = por %p172_p7, %p58_p0  ;;  %p1142_p12 = por %p178_p8, %p64_p3 }
  0x11   : > { %p1146_p13 = pnand %p773_p9, %p185_p10  ;;  %s198_s14 = sshll.u32 %s1330_s0, 4  ;;  %s199_s14 = int_to_ptr.vmem [resolvable:$true] %s198_s14 }
  0x12   : > { %s1342_s9 = scalar_select %p1138_p11, 1, 0 }
  0x13   : > { %s1343_s10 = scalar_select %p1142_p12, 1, 0 }
  0x14   : > { %p841_p1 = pneg %p1146_p13  ;;  %p854_p2 = scmp.lt.s32.totalorder %s1038_s24, 2 }
  0x15   : > { %s221_s16 = sand.u32 1, %s1034_s23   ;;  %s923_s19 = scalar_lea.vmem %s199_s14, 16 }
  0x16   : > { %p1159_p7 = pnand %p841_p1, %p1338_p4  ;;  %p1166_p3 = pnand %p854_p2, %p1125_p5 }
  0x17   : > { %s776_s18 = sshll.u32 %s221_s16, 6  ;;  %p924_p8 = scmp.ne.s32.totalorder %s199_s14, %s923_s19 }
  0x18   : > { %p925_p9 = pneg %p1159_p7  ;;  %p931_p12 = scmp.lt.s32.totalorder %s199_s14, %s199_s14 }
  0x19   : > { %p932_p11 = scmp.lt.s32.totalorder %s923_s19, %s923_s19 }
  0x1a   : > { %p926_p10 = pnand %p925_p9, %p924_p8 }
  0x1b   : > { %p933_p1 = por %p932_p11, %p931_p12 }
  0x1c   : > { %p927_p0 = pneg %p926_p10 }
  0x1e   : > { %p934_p4 = pnand %p933_p1, %p927_p0 }
  0x20   : > { %937 = shalt.err (!%p934_p4)
}
  0x21   : > { %s1040_s20 = smov [#allocation2]   ;;  %s801_s26 = sshll.u32 %s1038_s24, 10 }
  0x22   : > { %844 = dma.vmem_to_smem (!%p1159_p7), %s199_s14, 16, %s1040_s20, [#allocation5]  }
  0x23   : > { %s225_s28 = scalar_lea.vmem [#allocation6], %s776_s18  ;;  %s1178_s13 = scalar_lea.hbm %s1331_s1, %s801_s26 }
  0x24   : > { %s232_s29 = sshll.u32 %s225_s28, 4  ;;  %s1182_s19 = scalar_lea.sflag [#allocation3], %s221_s16  ;;  %s1180_s29 = int_to_ptr.vmem [resolvable:$true] %s232_s29 }
  0x25   : > { %s938_s15 = scalar_lea.hbm %s1178_s13, 1024  ;;  %p940_p5 = pneg %p1166_p3 }
  0x26   : > { %p939_p4 = scmp.ne.s32.totalorder %s1178_s13, %s938_s15  ;;  %s943_s20 = scalar_lea.hbm %s1331_s1, 2048 }
  0x27   : > { %p944_p0 = scmp.lt.u32.totalorder %s1178_s13, %s1331_s1  ;;  %p945_p2 = scmp.lt.u32.totalorder %s943_s20, %s938_s15 }
  0x28   : > { %p941_p11 = pnand %p940_p5, %p939_p4  ;;  %p947_p8 = scmp.lt.u32.totalorder %s938_s15, %s1178_s13 }
  0x29   : > { %p946_p7 = por %p945_p2, %p944_p0 }
  0x2a   : > { %p942_p12 = pneg %p941_p11 }
  0x2b   : > { %p948_p9 = por %p947_p8, %p946_p7 }
  0x2d   : > { %p949_p10 = pnand %p948_p9, %p942_p12 }
  0x2f   : > { %952 = shalt.err (!%p949_p10)
}
  0x30   : > { %s953_s16 = scalar_lea.vmem %s1180_s29, 1024  ;;  %s1041_s7 = smov [#allocation6]  }
  0x31   : > { %p954_p1 = scmp.ne.s32.totalorder %s1180_s29, %s953_s16  ;;  %s958_s12 = sshll.u32 %s1041_s7, 4  ;;  %s959_s12 = int_to_ptr.vmem [resolvable:$false] %s958_s12 }
  0x32   : > { %s960_s14 = scalar_lea.vmem %s959_s12, 2048  ;;  %p961_p6 = scmp.lt.s32.totalorder %s1180_s29, %s959_s12 }
  0x33   : > { %p956_p4 = pnand %p954_p1, %p940_p5  ;;  %p962_p0 = scmp.lt.s32.totalorder %s960_s14, %s953_s16 }
  0x35   : > { %p957_p11 = pneg %p956_p4  ;;  %p963_p2 = por %p962_p0, %p961_p6 }
  0x37   : > { %p964_p7 = pnand %p963_p2, %p957_p11 }
  0x39   : > { %967 = shalt.err (!%p964_p7)
}
  0x3a   : > { %s1042_s15 = smov 128   ;;  %s1043_s18 = smov 8  }
  0x3b   : > { %848 = dma.hbm_to_vmem [thread:$0]  (!%p1166_p3), %s1178_s13, 1024, %s1180_s29, %s1182_s19, %s1042_s15, %s1042_s15, %s1043_s18  }
  0x3c   : > { %244 = sbr.rel (%p1146_p13) target bundleno = 1065 (0x429), region = 44  ;;  %p1347_p5 = scmp.eq.s32.totalorder (!%p1146_p13), %s1107_s25, 0 }
  0x43   : > { %1013 = dma.done.wait (%p1347_p5), [#allocation5], 16   ;;  %p1348_p12 = pmov %p1347_p5 }
  0x44   : > { %s1217_s20 = sand.u32 1, %s1030_s22   ;;  %p1349_p6 = scmp.ne.s32.totalorder %s1341_s8, 0 }
  0x45   : > { %1015 = vsyncadd (%p1348_p12), [#allocation5], 4294967280  ;;  %s781_s26 = sshll.u32 %s1217_s20, 6  ;;  %s251_s28 = scalar_lea.sflag [#allocation3], %s1217_s20 }
  0x46   : > { %s1221_s16 = scalar_lea.vmem [#allocation6], %s781_s26 }
  0x47   : > { %1017 = dma.done.wait (%p1349_p6), %s251_s28, 1024  }
  0x48   : > { %1019 = vsyncadd (%p1349_p6), %s251_s28, 4294966272 }
  0x49   : > { %259 = sfence }
  0x4a   : > { %v286_v0 = vld [vmem:[%s1333_s3] sm:$0xff]  ;;  %v1044_v2 = vmov 0   ;;  %v287_v3 = vld [vmem:[%s1333_s3 + $0x8] sm:$0xff]  ;;  %v1045_v5 = vmov 1   ;;  %v1046_v6 = vmov 2   ;;  %s290_s14 = sld [smem:[#allocation2]] }
  0x4b   : > { %v284_v1 = vld [vmem:[%s1332_s2] sm:$0xff]  ;;  %900 = vset.pattern.permute.xlu1 %v1044_v2  ;;  %899 = vset.pattern.permute.xlu0 %v1044_v2  ;;  %v285_v4 = vld [vmem:[%s1332_s2 + $0x8] sm:$0xff]  ;;  %s785_s15 = sld [smem:[#allocation2 + $0x1]]  ;;  %v1047_v7 = vmov 3   ;;  %s788_s18 = sld [smem:[#allocation2 + $0x2]]  ;;  %v783_v10 = vld [vmem:[%s1221_s16 + $0x10] sm:$0xff] }
  0x4c   : > { %320 = vperm.xlu1 %900, %v286_v0   ;;  %298 = vperm.xlu0 %899, %v284_v1   ;;  %v288_v8 = vld [vmem:[%s1221_s16] sm:$0xff]  ;;  %s791_s26 = sld [smem:[#allocation2 + $0x3]]  ;;  %v289_v14 = vld [vmem:[%s1221_s16 + $0x8] sm:$0xff]  ;;  %v784_v15 = vld [vmem:[%s1221_s16 + $0x18] sm:$0xff]  ;;  %vm308_vm0 = vcmask 130048   ;;  %s782_s8 = sshll.u32 %s1217_s20, 4 }
  0x4d   : > { %v786_v16 = vld [vmem:[%s1221_s16 + $0x20] sm:$0xff]  ;;  %v787_v22 = vld [vmem:[%s1221_s16 + $0x28] sm:$0xff]  ;;  %v789_v23 = vld [vmem:[%s1221_s16 + $0x30] sm:$0xff]  ;;  %s802_s12 = sshll.u32 %s1107_s25, 8  ;;  %p1350_p3 = scmp.ne.s32.totalorder %s1342_s9, 0 }
  0x4e   : > { %v790_v29 = vld [vmem:[%s1221_s16 + $0x38] sm:$0xff]  ;;  %s1283_s28 = scalar_lea.hbm %s1336_s6, %s802_s12  ;;  %s674_s16 = scalar_lea.sflag [#allocation4], %s1217_s20 }
  0x4f   : > { %s1048_s11 = smov [#allocation7]  }
  0x50   : > { %325 = vperm.xlu1 %900, %v287_v3   ;;  %303 = vperm.xlu0 %899, %v285_v4   ;;  %v291_v9 = vstv %s290_s14  ;;  %s283_s14 = scalar_lea.vmem [#allocation7], %s782_s8  ;;  %s972_s17 = sshll.u32 %s1048_s11, 4  ;;  %s973_s17 = int_to_ptr.vmem [resolvable:$false] %s972_s17 }
  0x51   : > { %v336_v11 = vstv %s785_s15  ;;  %v292_v12 = vmul.f32 %v291_v9, %v288_v8  ;;  %v368_v17 = vstv %s788_s18  ;;  %v293_v18 = vmul.f32 %v291_v9, %v289_v14  ;;  %s687_s15 = sshll.u32 %s283_s14, 4  ;;  %s974_s29 = scalar_lea.vmem %s973_s17, 512  ;;  %s1285_s15 = int_to_ptr.vmem [resolvable:$true] %s687_s15 }
  0x52   : > { %v337_v13 = vmul.f32 %v783_v10, %v336_v11  ;;  %v338_v19 = vmul.f32 %v784_v15, %v336_v11  ;;  %v369_v21 = vmul.f32 %v786_v16, %v368_v17  ;;  %v400_v24 = vstv %s791_s26  ;;  %s968_s25 = scalar_lea.vmem %s1285_s15, 256  ;;  %p975_p10 = scmp.lt.s32.totalorder %s1285_s15, %s973_s17 }
  0x53   : > { %v370_v25 = vmul.f32 %v787_v22, %v368_v17  ;;  %v401_v27 = vmul.f32 %v789_v23, %v400_v24  ;;  %v402_v30 = vmul.f32 %v790_v29, %v400_v24  ;;  %p969_p13 = scmp.ne.s32.totalorder %s1285_s15, %s968_s25  ;;  %p976_p1 = scmp.lt.s32.totalorder %s974_s29, %s968_s25 }
  0x54   : > { %902 = vset.pattern.permute.xlu1 %v1045_v5  ;;  %901 = vset.pattern.permute.xlu0 %v1045_v5  ;;  %v339_v20 = vadd.f32 %v337_v13, %v292_v12  ;;  %v340_v28 = vadd.f32 %v338_v19, %v293_v18 }
  0x55   : > { %357 = vperm.xlu1 %902, %v287_v3   ;;  %353 = vperm.xlu0 %901, %v286_v0   ;;  %p970_p8 = pnand %p969_p13, %p1350_p3  ;;  %p977_p4 = por %p976_p1, %p975_p10 }
  0x56   : > { %v371_v26 = vadd.f32 %v369_v21, %v339_v20  ;;  %v372_v32 = vadd.f32 %v370_v25, %v340_v28 }
  0x57   : > { %p971_p9 = pneg %p970_p8 }
  0x58   : > { %v403_v31 = vadd.f32 %v401_v27, %v371_v26  ;;  %v404_v33 = vadd.f32 %v402_v30, %v372_v32 }
  0x59   : > { %903 = vset.pattern.permute.xlu1 %v1046_v6  ;;  %904 = vset.pattern.permute.xlu0 %v1046_v6  ;;  %p978_p11 = pnand %p977_p4, %p971_p9 }
  0x5a   : > { %385 = vperm.xlu1 %903, %v286_v0   ;;  %389 = vperm.xlu0 %904, %v287_v3  }
  0x5e   : > { %905 = vset.pattern.permute.xlu1 %v1047_v7 }
  0x5f   : > { %417 = vperm.xlu1 %905, %v286_v0  }
  0x63   : > { %421 = vperm.xlu1 %905, %v287_v3  }
  0x78   : > { %428 = vxpose.xlu0.b32.start [1/2] (short) (narrow) %v403_v31, 16 }
  0x7c   : > { %429 = vxpose.xlu0.b32.end [2/2] (short) (narrow) %v404_v33, 16 }
  0xa5   : > { %906 = vset.pattern.permute.xlu0 %v1047_v7 }
  0xcb   : > { %v299_v34 = vpop.permute.xlu0 %298  ;;  %v321_v35 = vpop.permute.xlu1 %320 }
  0xcc   : > { %v306_v36 = vmul.f32 %v299_v34, %v288_v8  ;;  %v341_v37 = vmul.f32 %v783_v10, %v299_v34  ;;  %v373_v38 = vmul.f32 %v786_v16, %v299_v34  ;;  %v405_v39 = vmul.f32 %v789_v23, %v299_v34 }
  0xce   : > { %v309_v46 = vsel %vm308_vm0, %v306_v36, 0.0  ;;  %v343_v47 = vsel %vm308_vm0, %v341_v37, 0.0  ;;  %v375_v48 = vsel %vm308_vm0, %v373_v38, 0.0  ;;  %v407_v49 = vsel %vm308_vm0, %v405_v39, 0.0 }
  0xcf   : > { %v304_v40 = vpop.permute.xlu0 %303  ;;  %v326_v41 = vpop.permute.xlu1 %325 }
  0xd0   : > { %v307_v42 = vmul.f32 %v304_v40, %v289_v14  ;;  %v342_v43 = vmul.f32 %v784_v15, %v304_v40  ;;  %v374_v44 = vmul.f32 %v787_v22, %v304_v40  ;;  %v406_v45 = vmul.f32 %v790_v29, %v304_v40 }
  0xd2   : > { %v310_v50 = vsel %vm308_vm0, %v307_v42, 0.0  ;;  %v344_v51 = vsel %vm308_vm0, %v342_v43, 0.0  ;;  %v376_v52 = vsel %vm308_vm0, %v374_v44, 0.0  ;;  %v408_v53 = vsel %vm308_vm0, %v406_v45, 0.0  ;;  %v461_v42 = vld [vmem:[%s1334_s4 + $0x8] sm:$0xff]  ;;  %v460_v43 = vld [vmem:[%s1334_s4] sm:$0xff] }
  0xd3   : > { %v311_v54 = vadd.f32 %v310_v50, %v309_v46  ;;  %v345_v55 = vadd.f32 %v344_v51, %v343_v47  ;;  %v377_v56 = vadd.f32 %v376_v52, %v375_v48  ;;  %v409_v57 = vadd.f32 %v408_v53, %v407_v49 }
  0xd4   : > { %v358_v58 = vpop.permute.xlu1 %357  ;;  %v354_v12 = vpop.permute.xlu0 %353 }
  0xd5   : > { %v312_v59 = vrot.slane %v311_v54, 4  ;;  %v346_v60 = vrot.slane %v345_v55, 4  ;;  %v378_v61 = vrot.slane %v377_v56, 4  ;;  %v410_v62 = vrot.slane %v409_v57, 4 }
  0xd7   : > { %v313_v63 = vadd.f32 %v312_v59, %v311_v54  ;;  %v347_v0 = vadd.f32 %v346_v60, %v345_v55  ;;  %v379_v1 = vadd.f32 %v378_v61, %v377_v56  ;;  %v411_v2 = vadd.f32 %v410_v62, %v409_v57  ;;  %v556_v59 = vld [vmem:[%s1335_s5 + $0x8] sm:$0xff] }
  0xd9   : > { %v314_v3 = vrot.slane %v313_v63, 2  ;;  %v348_v4 = vrot.slane %v347_v0, 2  ;;  %v380_v5 = vrot.slane %v379_v1, 2  ;;  %v386_v6 = vpop.permute.xlu1 %385  ;;  %v412_v7 = vrot.slane %v411_v2, 2  ;;  %v390_v26 = vpop.permute.xlu0 %389 }
  0xdb   : > { %v315_v8 = vadd.f32 %v314_v3, %v313_v63  ;;  %v349_v9 = vadd.f32 %v348_v4, %v347_v0  ;;  %v381_v10 = vadd.f32 %v380_v5, %v379_v1  ;;  %v413_v11 = vadd.f32 %v412_v7, %v411_v2 }
  0xdd   : > { %v316_v13 = vrot.slane %v315_v8, 1  ;;  %v350_v14 = vrot.slane %v349_v9, 1  ;;  %v382_v15 = vrot.slane %v381_v10, 1  ;;  %v414_v16 = vrot.slane %v413_v11, 1 }
  0xde   : > { %v418_v17 = vpop.permute.xlu1 %417 }
  0xdf   : > { %v317_v18 = vadd.f32 %v316_v13, %v315_v8  ;;  %v351_v19 = vadd.f32 %v350_v14, %v349_v9  ;;  %v383_v20 = vadd.f32 %v382_v15, %v381_v10  ;;  %v415_v21 = vadd.f32 %v414_v16, %v413_v11 }
  0xe1   : > { %v329_v22 = vmul.f32 %v326_v41, %v317_v18  ;;  %v328_v23 = vmul.f32 %v321_v35, %v317_v18  ;;  %v360_v24 = vmul.f32 %v354_v12, %v351_v19  ;;  %v361_v25 = vmul.f32 %v358_v58, %v351_v19  ;;  %v555_v41 = vld [vmem:[%s1335_s5] sm:$0xff] }
  0xe2   : > { %v422_v27 = vpop.permute.xlu1 %421  ;;  %v393_v30 = vmul.f32 %v390_v26, %v383_v20  ;;  %v392_v31 = vmul.f32 %v386_v6, %v383_v20  ;;  %v424_v34 = vmul.f32 %v418_v17, %v415_v21  ;;  %822 = vmatprep.mubr.msk.f32.mxu1 %vm308_vm0, %v555_v41 }
  0xe3   : > { %v362_v28 = vadd.f32 %v360_v24, %v328_v23  ;;  %v363_v29 = vadd.f32 %v361_v25, %v329_v22  ;;  %v425_v36 = vmul.f32 %v422_v27, %v415_v21 }
  0xe5   : > { %v395_v32 = vadd.f32 %v393_v30, %v363_v29  ;;  %v394_v33 = vadd.f32 %v392_v31, %v362_v28 }
  0xe7   : > { %v426_v37 = vadd.f32 %v424_v34, %v394_v33  ;;  %v427_v38 = vadd.f32 %v425_v36, %v395_v32 }
  0xe9   : > { %v825_v39 = vpack.c.bf16 %v427_v38, %v426_v37 }
  0xeb   : > { %826 = vmatprep.subr.bf16.mxu0 %v825_v39 }
  0xec   : > { %828 = vmatpush3.bf16.msra.mxu0 %v825_v39 }
  0xf8   : > { %v444_v40 = vpop.trf.xlu0 }
  0xf9   : > { %815 = vmatprep.mubr.msk.f32.mxu0 %vm308_vm0, %v444_v40 }
  0xfc   : > { %v445_v35 = vpop.trf.xlu0 }
  0xfd   : > { %816 = vmatmul.mubr.msk.f32.vlgmr.msra.gmra.mrb[0].mxu0 %vm308_vm0, %v445_v35 }
 0x1d0   : > { %v817_v44 = vpop.f32.mrb[0].mxu0 }
 0x1d1   : > { %v540_v45 = vadd.f32 %v817_v44, %v461_v42  ;;  %v534_v46 = vpop.f32.mrb[1].mxu0 }
 0x1d2   : > { %v535_v47 = vadd.f32 %v534_v46, %v460_v43 }
 0x1d3   : > { %v544_v48 = vsub.f32 0.0, %v540_v45 }
 0x1d4   : > { %v543_v49 = vsub.f32 0.0, %v535_v47 }
 0x1d5   : > { %v547_v50 = vmul.f32 1.442695, %v544_v48 }
 0x1d6   : > { %v545_v51 = vmul.f32 1.442695, %v543_v49 }
 0x1d7   : > { %907 = vpow2.f32 %v547_v50 }
 0x1d8   : > { %909 = vpow2.f32 %v545_v51 }
 0x1e1   : > { %v908_v52 = vpop.eup %907 }
 0x1e2   : > { %v910_v53 = vpop.eup %909  ;;  %v550_v54 = vadd.f32 1.0, %v908_v52 }
 0x1e3   : > { %v549_v55 = vadd.f32 1.0, %v910_v53 }
 0x1e4   : > { %911 = vrcp.f32 %v550_v54 }
 0x1e5   : > { %913 = vrcp.f32 %v549_v55 }
 0x1ee   : > { %v912_v56 = vpop.eup %911 }
 0x1ef   : > { %v914_v57 = vpop.eup %913 }
 0x1f0   : > { %v829_v58 = vpack.c.bf16 %v912_v56, %v914_v57 }
 0x1f2   : > { %830 = vmatprep.subr.bf16.mxu1 %v829_v58 }
 0x1f3   : > { %832 = vmatpush3.bf16.msra.mxu1 %v829_v58 }
 0x1f6   : > { %823 = vmatmul.mubr.msk.f32.vlgmr.msra.gmra.mrb[0].mxu1 %vm308_vm0, %v556_v59 }
 0x2c9   : > { %v824_v60 = vpop.f32.mrb[0].mxu1 }
 0x2ca   : > { %v639_v61 = vsel %vm308_vm0, %v824_v60, -inf  ;;  %v629_v62 = vpop.f32.mrb[1].mxu1 }
 0x2cb   : > { %v638_v63 = vsel %vm308_vm0, %v629_v62, -inf }
 0x2cc   : > { %v640_v0 = vmax.f32 %v638_v63, %v639_v61 }
 0x2ce   : > { %v641_v1 = vrot.slane %v640_v0, 4 }
 0x2d0   : > { %v642_v2 = vmax.f32 %v640_v0, %v641_v1 }
 0x2d2   : > { %v643_v3 = vrot.slane %v642_v2, 2 }
 0x2d4   : > { %v644_v4 = vmax.f32 %v642_v2, %v643_v3 }
 0x2d6   : > { %v645_v5 = vrot.slane %v644_v4, 1 }
 0x2d8   : > { %v646_v6 = vmax.f32 %v644_v4, %v645_v5 }
 0x2da   : > { %v647_v7 = vsub.f32 %v629_v62, %v646_v6  ;;  %v648_v8 = vsub.f32 %v824_v60, %v646_v6 }
 0x2dc   : > { %v652_v9 = vsel %vm308_vm0, %v648_v8, -inf  ;;  %v649_v10 = vsel %vm308_vm0, %v647_v7, -inf }
 0x2dd   : > { %653 = vmax.xlane.f32.xlu0 %v652_v9  ;;  %650 = vmax.xlane.f32.xlu1 %v649_v10 }
 0x36a   : > { %v654_v11 = vpop.xlane.xlu0 %653  ;;  %v651_v12 = vpop.xlane.xlu1 %650 }
 0x36b   : > { %v656_v13 = vsub.f32 %v648_v8, %v654_v11  ;;  %v655_v14 = vsub.f32 %v647_v7, %v651_v12 }
 0x36d   : > { %v657_v15 = vmul.f32 1.442695, %v655_v14  ;;  %v659_v16 = vmul.f32 1.442695, %v656_v13 }
 0x36f   : > { %915 = vpow2.f32 %v657_v15 }
 0x370   : > { %917 = vpow2.f32 %v659_v16 }
 0x379   : > { %v916_v17 = vpop.eup %915 }
 0x37a   : > { %v661_v18 = vsel %vm308_vm0, %v916_v17, 0.0  ;;  %v918_v19 = vpop.eup %917 }
 0x37b   : > { %662 = vadd.xlane.f32.xlu1 %v661_v18  ;;  %v664_v20 = vsel %vm308_vm0, %v918_v19, 0.0 }
 0x37f   : > { %665 = vadd.xlane.f32.xlu1 %v664_v20 }
 0x408   : > { %v663_v21 = vpop.xlane.xlu1 %662 }
 0x409   : > { %919 = vrcp.f32 %v663_v21 }
 0x40c   : > { %v666_v22 = vpop.xlane.xlu1 %665 }
 0x40d   : > { %921 = vrcp.f32 %v666_v22 }
 0x413   : > { %v920_v23 = vpop.eup %919 }
 0x414   : > { %v668_v24 = vmul.f32 %v920_v23, %v916_v17 }
 0x416   : > { %671 = vst.msk [vmem:[%s283_s14] sm:$0xff] %vm308_vm0, %v668_v24 }
 0x417   : > { %v922_v25 = vpop.eup %921 }
 0x418   : > { %v670_v26 = vmul.f32 %v922_v25, %v918_v19 }
 0x41a   : > { %672 = vst.msk [vmem:[%s283_s14 + $0x8] sm:$0xff] %vm308_vm0, %v670_v26 }
 0x41b   : > { %981 = shalt.err (!%p978_p11)
}
 0x41c   : > { %s982_s13 = scalar_lea.hbm %s1283_s28, 256  ;;  %s986_s8 = scalar_lea.hbm %s1336_s6, 512 }
 0x41d   : > { %p983_p0 = scmp.ne.s32.totalorder %s1283_s28, %s982_s13  ;;  %p987_p5 = scmp.lt.u32.totalorder %s1283_s28, %s1336_s6 }
 0x41e   : > { %p988_p12 = scmp.lt.u32.totalorder %s986_s8, %s982_s13  ;;  %p990_p13 = scmp.lt.u32.totalorder %s982_s13, %s1283_s28 }
 0x41f   : > { %p984_p2 = pnand %p983_p0, %p1350_p3 }
 0x420   : > { %p989_p6 = por %p988_p12, %p987_p5 }
 0x421   : > { %p985_p7 = pneg %p984_p2 }
 0x422   : > { %p991_p8 = por %p990_p13, %p989_p6 }
 0x424   : > { %p992_p9 = pnand %p991_p8, %p985_p7 }
 0x426   : > { %995 = shalt.err (!%p992_p9)
}
 0x427   : > { %s1049_s18 = smov 128   ;;  %s1050_s26 = smov 8  }
 0x428   : > { %839 = dma.vmem_to_hbm [thread:$0]  (%p1350_p3), %s1285_s15, 256, %s1283_s28, %s674_s16, %s1049_s18, %s1049_s18, %s1050_s26  }
 0x429 PF: > { %s702_s25 = sand.u32 1, %s1026_s21   ;;  %p1351_p10 = scmp.ne.s32.totalorder %s1343_s10, 0 }
 0x42a   : > { %p1352_p1 = scmp.ge.s32.totalorder %s1038_s24, 2  ;;  %s703_s11 = scalar_lea.sflag [#allocation4], %s702_s25 }
 0x42c   : > { %p850_p4 = pnand %p1352_p1, %p1351_p10 }
 0x42e   : > { %1021 = dma.done.wait (!%p850_p4), %s703_s11, 256  }
 0x42f   : > { %1023 = vsyncadd (!%p850_p4), %s703_s11, 4294967040  ;;  %p20_p11 = scmp.ge.s32.totalorder %s1111_s27, 4   ;;  %s1353_s21 = smov %s1030_s22 }
 0x430   : > { %s1354_s22 = smov %s1034_s23  ;;  %s1355_s23 = smov %s1123_s30 }
 0x431   : > { %s1356_s24 = smov %s1111_s27  ;;  %22 = sbr.rel (!%p20_p11) target bundleno = 6 (0x6), region = 97 }
 0x438   :  { %708 = vsyncpa [#allocation3], 1 }
 0x439   :  { %710 = vsyncpa [#allocation3 + $0x1], 1 }
 0x43a   :  { %711 = vsyncpa [#allocation4], 1 }
 0x43b   :  { %713 = vsyncpa [#allocation4 + $0x1], 1 }
 0x43c   :  { %714 = vsyncpa [#allocation5], 1 }
 0x43d   :  { %716 = vsyncpa [#allocation5 + $0x1], 1 }

</bundles_post_ra>
